<compile_context>
chip_gen: v7x
topology: tpu7x:2x2x1
jax: 0.10.0
libtpu: 0.0.40
codegen_flags: <defaults>
</compile_context>

<pallas_src>
import math

import jax
import jax.numpy as jnp
from jax.experimental import pallas as pl
from jax.experimental.pallas import tpu as pltpu


# TODO(synk): only kernel_size=1 / padding=0 (the module defaults) are
# implemented; a general depthwise conv1d along the flattened spatial dim
# would need a shifted-window accumulation over T.


def _lwc_kernel(x_ref, w1_ref, w2_ref, b_ref, o_ref):
    """One channels-major token block.

    x_ref : (C,  TT)  input block, tokens on lanes
    w1_ref: (2C, C)   project1 weight with the lw-conv scale folded in
    w2_ref: (C,  2C)  project2 weight with the LayerNorm gamma folded in
    b_ref : (C,  1)   W2 @ beta output bias (f32)
    o_ref : (C,  TT)  output block
    """
    # project1 (1x1 conv, scale folded in): (2C, C) @ (C, TT) -> (2C, TT)
    y1 = jnp.dot(w1_ref[...], x_ref[...], preferred_element_type=jnp.float32)

    # WithBias LayerNorm over channels (axis 0 here), eps=1e-5, biased var.
    # One-pass statistics: two independent reductions instead of the serial
    # mean -> subtract -> square -> mean chain.
    inv_n = 1.0 / y1.shape[0]
    s1 = jnp.sum(y1, axis=0, keepdims=True)           # (1, TT)
    s2 = jnp.sum(y1 * y1, axis=0, keepdims=True)      # (1, TT)
    mu = s1 * inv_n
    var = s2 * inv_n - mu * mu
    normed = (y1 - mu) * jax.lax.rsqrt(var + 1e-5)    # gamma/beta folded away

    # project2 (1x1 conv, gamma folded in): (C, 2C) @ (2C, TT) -> (C, TT)
    y2 = jnp.dot(w2_ref[...], normed.astype(w2_ref.dtype),
                 preferred_element_type=jnp.float32)
    o_ref[...] = (y2 + b_ref[...]).astype(o_ref.dtype)


def light_weight_conv_forward(x, params, *, num_heads, token_tile=256,
                              compute_dtype=None):
    """x: NCHW float32 (B, C, H, W).  Returns NCHW (B, C, Wsq, Wsq)."""
    lw_weight, w1, gamma, beta, w2 = params
    B, C, Hh, Ww = x.shape
    T = Hh * Ww
    Wsq = math.isqrt(T)            # == int(np.sqrt(T)) for practical sizes
    T_out = Wsq * Wsq
    C2 = 2 * C
    assert C % num_heads == 0

    # ---- host-side weight folding (exact algebraic rearrangements) ----
    # LightweightConv1d (K=1, groups=num_heads) is a per-channel scale.
    scale = lw_weight[jnp.arange(C) % num_heads, 0, 0]           # (C,)
    w1s = w1 * scale[None, :]                                    # (2C, C)
    # W2 @ (normed * gamma + beta) == (W2 * gamma) @ normed + W2 @ beta
    w2g = w2 * gamma[None, :]                                    # (C, 2C)
    bias2 = (w2 @ beta).astype(jnp.float32).reshape(C, 1)        # (C, 1)

    # ---- channels-major layout: tokens on lanes, no HBM transposes ----
    x_cm = x.reshape(B, C, T)[:, :, :T_out].reshape(B * C, T_out)

    TT = int(token_tile)
    assert TT % 128 == 0, "token tile must be a multiple of 128 lanes"
    T_pad = pl.cdiv(T_out, TT) * TT
    if T_pad != T_out:
        # LayerNorm is strictly per-token, so zero-padded tokens are computed
        # independently and cropped afterwards — safe, no cross-token mixing.
        x_cm = jnp.pad(x_cm, ((0, 0), (0, T_pad - T_out)))

    if compute_dtype is not None:
        # Optional bf16 MXU inputs (v6e/v7x); accumulation/LayerNorm stay f32.
        x_cm = x_cm.astype(compute_dtype)
        w1s = w1s.astype(compute_dtype)
        w2g = w2g.astype(compute_dtype)

    out_cm = pl.pallas_call(
        _lwc_kernel,
        out_shape=jax.ShapeDtypeStruct((B * C, T_pad), x.dtype),
        grid_spec=pltpu.PrefetchScalarGridSpec(
            num_scalar_prefetch=0,
            grid=(B, T_pad // TT),
            in_specs=[
                pl.BlockSpec((C, TT), lambda b, t: (b, t)),   # x block
                pl.BlockSpec((C2, C), lambda b, t: (0, 0)),   # W1 * scale
                pl.BlockSpec((C, C2), lambda b, t: (0, 0)),   # W2 * gamma
                pl.BlockSpec((C, 1), lambda b, t: (0, 0)),    # W2 @ beta
            ],
            out_specs=pl.BlockSpec((C, TT), lambda b, t: (b, t)),
        ),
        compiler_params=pltpu.CompilerParams(
            dimension_semantics=("parallel", "parallel")),
    )(x_cm, w1s, w2g, bias2)

    # Crop padded tokens; reshape only (layout already NCHW-compatible).
    return out_cm[:, :T_out].reshape(B, C, Wsq, Wsq)


def _reference_forward(x, params, *, num_heads):
    """Pure-JAX reference mirroring the PyTorch module."""
    lw_weight, w1, gamma, beta, w2 = params
    B, C, Hh, Ww = x.shape
    T = Hh * Ww
    Wsq = math.isqrt(T)

    scale = lw_weight[jnp.arange(C) % num_heads, 0, 0]
    xc = x.reshape(B, C, T)[:, :, :Wsq * Wsq].reshape(B, C, Wsq, Wsq)
    xc = xc * scale[None, :, None, None]

    y1 = jnp.einsum('oc,bchw->bohw', w1, xc)
    mu = y1.mean(axis=1, keepdims=True)
    var = ((y1 - mu) ** 2).mean(axis=1, keepdims=True)
    nrm = (y1 - mu) / jnp.sqrt(var + 1e-5)
    nrm = nrm * gamma[None, :, None, None] + beta[None, :, None, None]
    return jnp.einsum('oc,bchw->bohw', w2, nrm)


if __name__ == "__main__":
    # Module defaults: input_size=64 channels, num_heads=8, kernel_size=1.
    B, C, Hs, Ws = 2, 64, 16, 16
    num_heads = 8
    C2 = 2 * C

    key = jax.random.PRNGKey(0)
    kx, kw, k1, kg, kb, k2 = jax.random.split(key, 6)

    x = jax.random.normal(kx, (B, C, Hs, Ws), dtype=jnp.float32)

    # Deterministic parameter init (shapes from the module __init__).
    lw_weight = jax.random.normal(kw, (num_heads, 1, 1), dtype=jnp.float32) * 0.5
    w1 = jax.random.normal(k1, (C2, C), dtype=jnp.float32) * (1.0 / math.sqrt(C))
    gamma = 1.0 + 0.1 * jax.random.normal(kg, (C2,), dtype=jnp.float32)
    beta = 0.1 * jax.random.normal(kb, (C2,), dtype=jnp.float32)
    w2 = jax.random.normal(k2, (C, C2), dtype=jnp.float32) * (1.0 / math.sqrt(C2))

    params = (lw_weight, w1, gamma, beta, w2)

    out = light_weight_conv_forward(x, params, num_heads=num_heads)
    out = jax.block_until_ready(out)

    ref = _reference_forward(x, params, num_heads=num_heads)
    ref = jax.block_until_ready(ref)

    assert out.shape == (B, C, Ws, Ws), out.shape
    max_err = float(jnp.max(jnp.abs(out - ref)))
    assert jnp.allclose(out, ref, atol=1e-4, rtol=1e-4), max_err

    print("KERNEL_OK")
</pallas_src>

<mosaic_0001>
module attributes {stable_mosaic.version = 11 : i64} {
  func.func @_lwc_kernel(%arg0: i32, %arg1: i32, %arg2: memref<64x256xf32, #tpu.memory_space<vmem>>, %arg3: memref<128x64xf32, #tpu.memory_space<vmem>>, %arg4: memref<64x128xf32, #tpu.memory_space<vmem>>, %arg5: memref<64x1xf32, #tpu.memory_space<vmem>>, %arg6: memref<64x256xf32, #tpu.memory_space<vmem>>) attributes {dimension_semantics = [#tpu.dimension_semantics<parallel>, #tpu.dimension_semantics<parallel>], iteration_bounds = array<i64: 2, 1>, scalar_prefetch = 0 : i64, scratch_operands = 0 : i64, tpu.core_type = #tpu.core_type<tc>, window_params = [{transform_indices = @transform_0, window_bounds = array<i64: 64, 256>}, {pipeline_mode = #tpu.pipeline_mode<synchronous>, transform_indices = @transform_1, window_bounds = array<i64: 128, 64>}, {pipeline_mode = #tpu.pipeline_mode<synchronous>, transform_indices = @transform_2, window_bounds = array<i64: 64, 128>}, {pipeline_mode = #tpu.pipeline_mode<synchronous>, transform_indices = @transform_3, window_bounds = array<i64: 64, 1>}, {transform_indices = @transform_4, window_bounds = array<i64: 64, 256>}]} {
    %c0 = arith.constant 0 : index
    %c0_0 = arith.constant 0 : index
    %0 = vector.load %arg3[%c0, %c0_0] : memref<128x64xf32, #tpu.memory_space<vmem>>, vector<128x64xf32>
    %c0_1 = arith.constant 0 : index
    %c0_2 = arith.constant 0 : index
    %1 = vector.load %arg2[%c0_1, %c0_2] : memref<64x256xf32, #tpu.memory_space<vmem>>, vector<64x256xf32>
    %cst = arith.constant dense<0.000000e+00> : vector<128x256xf32>
    %2 = tpu.matmul %0, %1, %cst {dimension_numbers = #tpu.dot_dimension_numbers<[1], [0], [0], [1], [0, 0, 1, 1], [], []>} : vector<128x64xf32>, vector<64x256xf32>, vector<128x256xf32> -> vector<128x256xf32>
    %cst_3 = arith.constant dense<0.000000e+00> : vector<256xf32>
    %3 = vector.multi_reduction <add>, %2, %cst_3 [0] : vector<128x256xf32> to vector<256xf32>
    %4 = vector.shape_cast %3 : vector<256xf32> to vector<1x256xf32>
    %5 = arith.mulf %2, %2 : vector<128x256xf32>
    %cst_4 = arith.constant dense<0.000000e+00> : vector<256xf32>
    %6 = vector.multi_reduction <add>, %5, %cst_4 [0] : vector<128x256xf32> to vector<256xf32>
    %7 = vector.shape_cast %6 : vector<256xf32> to vector<1x256xf32>
    %cst_5 = arith.constant 7.812500e-03 : f32
    %8 = vector.broadcast %cst_5 : f32 to vector<1x256xf32>
    %9 = arith.mulf %4, %8 : vector<1x256xf32>
    %cst_6 = arith.constant 7.812500e-03 : f32
    %10 = vector.broadcast %cst_6 : f32 to vector<1x256xf32>
    %11 = arith.mulf %7, %10 : vector<1x256xf32>
    %12 = arith.mulf %9, %9 : vector<1x256xf32>
    %13 = arith.subf %11, %12 : vector<1x256xf32>
    %14 = vector.broadcast %9 : vector<1x256xf32> to vector<128x256xf32>
    %15 = arith.subf %2, %14 : vector<128x256xf32>
    %cst_7 = arith.constant 9.99999974E-6 : f32
    %16 = vector.broadcast %cst_7 : f32 to vector<1x256xf32>
    %17 = arith.addf %13, %16 : vector<1x256xf32>
    %18 = math.rsqrt %17 : vector<1x256xf32>
    %19 = vector.broadcast %18 : vector<1x256xf32> to vector<128x256xf32>
    %20 = arith.mulf %15, %19 : vector<128x256xf32>
    %c0_8 = arith.constant 0 : index
    %c0_9 = arith.constant 0 : index
    %21 = vector.load %arg4[%c0_8, %c0_9] : memref<64x128xf32, #tpu.memory_space<vmem>>, vector<64x128xf32>
    %cst_10 = arith.constant dense<0.000000e+00> : vector<64x256xf32>
    %22 = tpu.matmul %21, %20, %cst_10 {dimension_numbers = #tpu.dot_dimension_numbers<[1], [0], [0], [1], [0, 0, 1, 1], [], []>} : vector<64x128xf32>, vector<128x256xf32>, vector<64x256xf32> -> vector<64x256xf32>
    %c0_11 = arith.constant 0 : index
    %c0_12 = arith.constant 0 : index
    %23 = vector.load %arg5[%c0_11, %c0_12] : memref<64x1xf32, #tpu.memory_space<vmem>>, vector<64x1xf32>
    %24 = vector.broadcast %23 : vector<64x1xf32> to vector<64x256xf32>
    %25 = arith.addf %22, %24 : vector<64x256xf32>
    %c0_13 = arith.constant 0 : index
    %c0_14 = arith.constant 0 : index
    %26 = vector.load %arg6[%c0_13, %c0_14] : memref<64x256xf32, #tpu.memory_space<vmem>>, vector<64x256xf32>
    tpu.vector_store %arg6[%c0_13, %c0_14], %25 {strides = array<i32>} : memref<64x256xf32, #tpu.memory_space<vmem>>, vector<64x256xf32>,
    return
  }
  func.func @transform_0(%arg0: i32, %arg1: i32) -> (i32, i32) {
    %c0_i32 = arith.constant 0 : i32
    return %arg0, %arg1 : i32, i32
  }
  func.func @transform_1(%arg0: i32, %arg1: i32) -> (i32, i32) {
    %c0_i32 = arith.constant 0 : i32
    %c0_i32_0 = arith.constant 0 : i32
    %c0_i32_1 = arith.constant 0 : i32
    return %c0_i32, %c0_i32_0 : i32, i32
  }
  func.func @transform_2(%arg0: i32, %arg1: i32) -> (i32, i32) {
    %c0_i32 = arith.constant 0 : i32
    %c0_i32_0 = arith.constant 0 : i32
    %c0_i32_1 = arith.constant 0 : i32
    return %c0_i32, %c0_i32_0 : i32, i32
  }
  func.func @transform_3(%arg0: i32, %arg1: i32) -> (i32, i32) {
    %c0_i32 = arith.constant 0 : i32
    %c0_i32_0 = arith.constant 0 : i32
    %c0_i32_1 = arith.constant 0 : i32
    return %c0_i32, %c0_i32_0 : i32, i32
  }
  func.func @transform_4(%arg0: i32, %arg1: i32) -> (i32, i32) {
    %c0_i32 = arith.constant 0 : i32
    return %arg0, %arg1 : i32, i32
  }
}

</mosaic_0001>

<bundles_post_ra>
// kernel: tpu_custom_call.1
= control target key start
LH: loop header
LB: loop body
LE: loop exit
PB: predicated region body
PF: predicated region fallthrough
CT: control target
= control target key end

     0   :  { %9 = vsyncpa [#allocation3], 0  ;;  %s1804_s0 = inlined_call_operand.vmem [shape: f32[128,256], index: 0, kind: input, shape index: {}]   ;;  %s1805_s1 = inlined_call_operand.vmem [shape: f32[128,64], index: 1, kind: input, shape index: {}]   ;;  %s1806_s2 = inlined_call_operand.hbm [shape: f32[64,128], index: 2, kind: input, shape index: {}]   ;;  %s1807_s3 = inlined_call_operand.vmem [shape: f32[64,1], index: 3, kind: input, shape index: {}]   ;;  %s1808_s4 = inlined_call_operand.hbm [shape: f32[128,256], index: 4, kind: output, shape index: {}]  }
   0x1   :  { %10 = vsyncpa [#allocation4], 0 }
   0x2   :  { %12 = vsyncpa [#allocation4 + $0x1], 0  ;;  %s1282_s15 = smov 0   ;;  %s1284_s16 = smov 0  }
   0x3   :  { %s1286_s17 = smov 0   ;;  %s1288_s18 = smov 0  }
   0x4   :  { %s1290_s19 = smov 0   ;;  %s1292_s20 = smov 0  }
   0x5 LB: > { %s975_s21 = sadd.s32 4294967295, %s1247_s20   ;;  %s976_s22 = sadd.s32 4294967294, %s1247_s20   ;;  %s1247_s20 = sphi %s1292_s20, %s18_s20   ;;  %s1243_s19 = sphi %s1290_s19, %s1826_s19   ;;  %s1239_s18 = sphi %s1288_s18, %s1825_s18   ;;  %s1235_s17 = sphi %s1286_s17, %s1824_s17   ;;  %s1231_s16 = sphi %s1284_s16, %s1823_s16   ;;  %s1227_s15 = sphi %s1282_s15, %s1822_s15  }
   0x6   : > { %s30_s23 = sadd.s32 1, %s1243_s19  ;;  %s130_s24 = sadd.s32 1, %s1235_s17 }
   0x7   : > { %p32_p0 = scmp.ge.s32.totalorder %s30_s23, 2  ;;  %p140_p1 = scmp.ne.s32.totalorder %s1235_s17, %s1231_s16 }
   0x8   : > { %p141_p2 = scmp.eq.s32.totalorder %s975_s21, 1  ;;  %p146_p3 = scmp.ne.s32.totalorder %s1231_s16, %s1227_s15 }
   0x9   : > { %s1828_s23 = smov (%p32_p0, %s30_s23), 0  ;;  %p147_p5 = scmp.eq.s32.totalorder %s976_s22, 1 }
   0xa   : > { %p1322_p4 = por %p141_p2, %p140_p1  ;;  %s125_s26 = ssub.s32 %s1243_s19, %s1828_s23 }
   0xb   : > { %p977_p6 = scmp.ge.s32.totalorder %s1247_s20, 1  ;;  %p128_p7 = scmp.eq.s32.totalorder %s125_s26, 0 }
   0xc   : > { %s1813_s25 = scalar_select %p1322_p4, 1, 0 }
   0xd   : > { %p1329_p8 = por %p147_p5, %p146_p3  ;;  %p154_p9 = scmp.lt.s32.totalorder %s1247_s20, 3 }
   0xe   : > { %s1335_s28 = scalar_select %p128_p7, %s1235_s17, %s130_s24  }
   0xf   : > { %s1814_s27 = scalar_select %p1329_p8, 1, 0 }
  0x10   : > { %p1337_p10 = pnand %p977_p6, %p154_p9  ;;  %p1341_p11 = scmp.eq.s32.totalorder %s975_s21, 0 }
  0x11   : > { %s1249_s5 = smov [#allocation2]   ;;  %s1137_s10 = scalar_lea.hbm %s1806_s2, 1024 }
  0x12   : > { %s1815_s29 = scalar_select %p1337_p10, 1, 0 }
  0x13   : > { %s1816_s30 = scalar_select %p1341_p11, 1, 0 }
  0x14   : > { %p1065_p12 = pneg %p1337_p10  ;;  %s169_s6 = sshll.u32 %s1249_s5, 4  ;;  %s170_s6 = int_to_ptr.vmem [resolvable:$true] %s169_s6 }
  0x15   : > { %p1138_p0 = scmp.ne.s32.totalorder %s1806_s2, %s1137_s10  ;;  %p1144_p5 = scmp.lt.u32.totalorder %s1137_s10, %s1806_s2 }
  0x16   : > { %p1349_p13 = pnand %p1341_p11, %p1065_p12 }
  0x18   : > { %p1139_p1 = pneg %p1349_p13 }
  0x1a   : > { %p1140_p2 = pnand %p1139_p1, %p1138_p0 }
  0x1c   : > { %p1141_p3 = pneg %p1140_p2 }
  0x1e   : > { %p1146_p6 = pnand %p1144_p5, %p1141_p3 }
  0x20   : > { %1149 = shalt.err (!%p1146_p6)
}
  0x21   : > { %s1150_s21 = scalar_lea.vmem %s170_s6, 1024  ;;  %p1158_p8 = scmp.lt.s32.totalorder %s170_s6, %s170_s6 }
  0x22   : > { %p1151_p7 = scmp.ne.s32.totalorder %s170_s6, %s1150_s21  ;;  %p1159_p4 = scmp.lt.s32.totalorder %s1150_s21, %s1150_s21 }
  0x24   : > { %p1153_p9 = pnand %p1151_p7, %p1139_p1  ;;  %p1160_p11 = por %p1159_p4, %p1158_p8 }
  0x26   : > { %p1154_p12 = pneg %p1153_p9 }
  0x28   : > { %p1161_p10 = pnand %p1160_p11, %p1154_p12 }
  0x2a   : > { %1164 = shalt.err (!%p1161_p10)
}
  0x2b   : > { %s1250_s22 = smov 128   ;;  %s1251_s24 = smov 8  }
  0x2c   : > { %1068 = dma.hbm_to_vmem [thread:$0]  (!%p1349_p13), %s1806_s2, 1024, %s170_s6, [#allocation3], %s1250_s22, %s1250_s22, %s1251_s24  }
  0x2d   : > { %p1818_p0 = scmp.ne.s32.totalorder %s1815_s29, 0 }
  0x2e   : > { %p1819_p2 = scmp.ne.s32.totalorder (!%p1818_p0), %s1816_s30, 0 }
  0x2f   : > { %203 = sbr.rel (%p1818_p0) target bundleno = 680 (0x2a8), region = 36 }
  0x36   : > { %1218 = dma.done.wait (%p1819_p2), [#allocation3], 1024  }
  0x37   : > { %1220 = vsyncadd (%p1819_p2), [#allocation3], 4294966272  ;;  %s983_s8 = sshll.u32 %s1239_s18, 3  ;;  %v1252_v0 = vmov 0.0   ;;  %v248_v25 = vld [vmem:[%s1805_s1] sm:$0xff]  ;;  %vm280_vm0 = vcmask 523264  }
  0x38   : > { %p236_p4 = scmp.lt.s32.totalorder %s983_s8, 15  ;;  %393 = vmatprep.mubr.f32.mxu0 %v1252_v0  ;;  %802 = vmatprep.mubr.f32.mxu1 %v1252_v0  ;;  %v249_v26 = vld [vmem:[%s1805_s1 + $0x8] sm:$0xff]  ;;  %v250_v27 = vld [vmem:[%s1805_s1 + $0x10] sm:$0xff]  ;;  %v251_v28 = vld [vmem:[%s1805_s1 + $0x18] sm:$0xff]  ;;  %s231_s30 = sand.u32 1, %s1231_s16  }
  0x39   : > { %v252_v29 = vld [vmem:[%s1805_s1 + $0x20] sm:$0xff]  ;;  %v253_v30 = vld [vmem:[%s1805_s1 + $0x28] sm:$0xff]  ;;  %v254_v31 = vld [vmem:[%s1805_s1 + $0x30] sm:$0xff]  ;;  %s982_s10 = sshll.u32 %s231_s30, 7  ;;  %s1010_s12 = sshll.u32 %s1239_s18, 11 }
  0x3a   : > { %s1830_s8 = smov (!%p236_p4, %s983_s8), 15  ;;  %v255_v32 = vld [vmem:[%s1805_s1 + $0x38] sm:$0xff]  ;;  %v256_v33 = vld [vmem:[%s1805_s1 + $0x40] sm:$0xff]  ;;  %v257_v34 = vld [vmem:[%s1805_s1 + $0x48] sm:$0xff]  ;;  %s1729_s11 = scalar_lea.vmem [#allocation5], %s982_s10 }
  0x3b   : > { %s1008_s7 = sshll.u32 %s1830_s8, 4  ;;  %v258_v35 = vld [vmem:[%s1805_s1 + $0x50] sm:$0xff]  ;;  %v259_v36 = vld [vmem:[%s1805_s1 + $0x58] sm:$0xff]  ;;  %v260_v37 = vld [vmem:[%s1805_s1 + $0x60] sm:$0xff]  ;;  %s884_s13 = sshll.u32 %s1729_s11, 4  ;;  %s1752_s13 = int_to_ptr.vmem [resolvable:$true] %s884_s13 }
  0x3c   : > { %s243_s29 = scalar_lea.vmem %s1804_s0, %s1008_s7  ;;  %v261_v38 = vld [vmem:[%s1805_s1 + $0x68] sm:$0xff]  ;;  %v262_v39 = vld [vmem:[%s1805_s1 + $0x70] sm:$0xff]  ;;  %v263_v40 = vld [vmem:[%s1805_s1 + $0x78] sm:$0xff]  ;;  %s1750_s22 = scalar_lea.hbm %s1808_s4, %s1010_s12 }
  0x3d   : > { %v265_v1 = vld [vmem:[%s243_s29 + $0x8] sm:$0xff]  ;;  %v267_v2 = vld [vmem:[%s243_s29 + $0x18] sm:$0xff]  ;;  %v264_v3 = vld [vmem:[%s243_s29] sm:$0xff]  ;;  %s1758_s18 = scalar_lea.sflag [#allocation4], %s231_s30  ;;  %s1165_s24 = scalar_lea.vmem %s1752_s13, 2048 }
  0x3e   : > { %v1011_v4 = vpack.c.bf16 %v267_v2, %v265_v1  ;;  %v266_v5 = vld [vmem:[%s243_s29 + $0x10] sm:$0xff]  ;;  %v269_v6 = vld [vmem:[%s243_s29 + $0x28] sm:$0xff]  ;;  %v271_v7 = vld [vmem:[%s243_s29 + $0x38] sm:$0xff]  ;;  %p1166_p8 = scmp.ne.s32.totalorder %s1752_s13, %s1165_s24  ;;  %p1820_p10 = scmp.ne.s32.totalorder %s1813_s25, 0 }
  0x3f   : > { %v1013_v8 = vpack.c.bf16 %v266_v5, %v264_v3  ;;  %v1015_v9 = vpack.c.bf16 %v271_v7, %v269_v6  ;;  %v268_v10 = vld [vmem:[%s243_s29 + $0x20] sm:$0xff]  ;;  %v270_v11 = vld [vmem:[%s243_s29 + $0x30] sm:$0xff]  ;;  %v273_v12 = vld [vmem:[%s243_s29 + $0x48] sm:$0xff]  ;;  %s1254_s26 = smov [#allocation5]  }
  0x40   : > { %1012 = vmatprep.subr.bf16.mxu0 %v1011_v4  ;;  %v275_v13 = vld [vmem:[%s243_s29 + $0x58] sm:$0xff]  ;;  %v1017_v14 = vpack.c.bf16 %v270_v11, %v268_v10  ;;  %v272_v16 = vld [vmem:[%s243_s29 + $0x40] sm:$0xff]  ;;  %v274_v17 = vld [vmem:[%s243_s29 + $0x50] sm:$0xff]  ;;  %p1167_p11 = pnand %p1166_p8, %p1820_p10  ;;  %s1169_s5 = sshll.u32 %s1254_s26, 4  ;;  %s1170_s5 = int_to_ptr.vmem [resolvable:$false] %s1169_s5 }
  0x41   : > { %1014 = vmatpush1.bf16.msra.mxu0 %v1013_v8  ;;  %v1019_v15 = vpack.c.bf16 %v275_v13, %v273_v12  ;;  %v277_v18 = vld [vmem:[%s243_s29 + $0x68] sm:$0xff]  ;;  %v279_v19 = vld [vmem:[%s243_s29 + $0x78] sm:$0xff]  ;;  %v1021_v20 = vpack.c.bf16 %v274_v17, %v272_v16  ;;  %v276_v22 = vld [vmem:[%s243_s29 + $0x60] sm:$0xff]  ;;  %s1171_s8 = scalar_lea.vmem %s1170_s5, 4096  ;;  %p1172_p1 = scmp.lt.s32.totalorder %s1752_s13, %s1170_s5 }
  0x42   : > { %1016 = vmatprep.subr.bf16.mxu0 %v1015_v9  ;;  %v1023_v21 = vpack.c.bf16 %v279_v19, %v277_v18  ;;  %v278_v23 = vld [vmem:[%s243_s29 + $0x70] sm:$0xff]  ;;  %p1168_p13 = pneg %p1167_p11  ;;  %p1173_p3 = scmp.lt.s32.totalorder %s1171_s8, %s1165_s24 }
  0x43   : > { %v1025_v24 = vpack.c.bf16 %v278_v23, %v276_v22 }
  0x44   : > { %p1174_p5 = por %p1173_p3, %p1172_p1 }
  0x45   : > { %1018 = vmatpush1.bf16.msra.mxu0 %v1017_v14 }
  0x46   : > { %1020 = vmatprep.subr.bf16.mxu0 %v1019_v15  ;;  %p1175_p6 = pnand %p1174_p5, %p1168_p13 }
  0x49   : > { %1022 = vmatpush1.bf16.msra.mxu0 %v1021_v20 }
  0x4a   : > { %1024 = vmatprep.subr.bf16.mxu0 %v1023_v21 }
  0x4d   : > { %1026 = vmatpush1.bf16.msra.mxu0 %v1025_v24 }
  0x50   : > { %986 = vmatmul.mubr.msk.f32.vlgmr.msra.gmra.mrb[0].mxu0 %vm280_vm0, %v248_v25 }
  0x51   : > { %399 = vmatprep.mubr.f32.mxu0 %v1252_v0 }
  0x54   : > { %987 = vmatmul.mubr.msk.f32.gmra.mrb[2].mxu0 %vm280_vm0, %v249_v26 }
  0x55   : > { %405 = vmatprep.mubr.f32.mxu0 %v1252_v0 }
  0x58   : > { %988 = vmatmul.mubr.msk.f32.gmra.mrb[4].mxu0 %vm280_vm0, %v250_v27 }
  0x59   : > { %411 = vmatprep.mubr.f32.mxu0 %v1252_v0 }
  0x5c   : > { %989 = vmatmul.mubr.msk.f32.gmra.mrb[6].mxu0 %vm280_vm0, %v251_v28 }
  0x5d   : > { %417 = vmatprep.mubr.f32.mxu0 %v1252_v0 }
  0x60   : > { %990 = vmatmul.mubr.msk.f32.gmra.mrb[8].mxu0 %vm280_vm0, %v252_v29 }
  0x61   : > { %423 = vmatprep.mubr.f32.mxu0 %v1252_v0 }
  0x64   : > { %991 = vmatmul.mubr.msk.f32.gmra.mrb[10].mxu0 %vm280_vm0, %v253_v30 }
  0x65   : > { %429 = vmatprep.mubr.f32.mxu0 %v1252_v0 }
  0x68   : > { %992 = vmatmul.mubr.msk.f32.gmra.mrb[12].mxu0 %vm280_vm0, %v254_v31 }
  0x69   : > { %435 = vmatprep.mubr.f32.mxu0 %v1252_v0 }
  0x6c   : > { %993 = vmatmul.mubr.msk.f32.gmra.mrb[14].mxu0 %vm280_vm0, %v255_v32 }
  0x6d   : > { %441 = vmatprep.mubr.f32.mxu0 %v1252_v0 }
  0x70   : > { %994 = vmatmul.mubr.msk.f32.gmra.mrb[16].mxu0 %vm280_vm0, %v256_v33 }
  0x71   : > { %447 = vmatprep.mubr.f32.mxu0 %v1252_v0 }
  0x74   : > { %995 = vmatmul.mubr.msk.f32.gmra.mrb[18].mxu0 %vm280_vm0, %v257_v34 }
  0x75   : > { %453 = vmatprep.mubr.f32.mxu0 %v1252_v0 }
  0x78   : > { %996 = vmatmul.mubr.msk.f32.gmra.mrb[20].mxu0 %vm280_vm0, %v258_v35 }
  0x79   : > { %459 = vmatprep.mubr.f32.mxu0 %v1252_v0 }
  0x7c   : > { %997 = vmatmul.mubr.msk.f32.gmra.mrb[22].mxu0 %vm280_vm0, %v259_v36 }
  0x7d   : > { %465 = vmatprep.mubr.f32.mxu0 %v1252_v0 }
  0x80   : > { %998 = vmatmul.mubr.msk.f32.gmra.mrb[24].mxu0 %vm280_vm0, %v260_v37  ;;  %v690_v37 = vld [vmem:[%s1807_s3] sm:$0xff] }
  0x81   : > { %471 = vmatprep.mubr.f32.mxu0 %v1252_v0 }
  0x84   : > { %999 = vmatmul.mubr.msk.f32.gmra.mrb[26].mxu0 %vm280_vm0, %v261_v38  ;;  %v692_v38 = vld [vmem:[%s1807_s3 + $0x10] sm:$0xff] }
  0x85   : > { %477 = vmatprep.mubr.f32.mxu0 %v1252_v0 }
  0x88   : > { %1000 = vmatmul.mubr.msk.f32.gmra.mrb[28].mxu0 %vm280_vm0, %v262_v39 }
  0x89   : > { %483 = vmatprep.mubr.f32.mxu0 %v1252_v0 }
  0x8c   : > { %1001 = vmatmul.mubr.msk.f32.gmra.mrb[30].mxu0 %vm280_vm0, %v263_v40 }
 0x123   : > { %v1460_v41 = vpop.f32.mrb[0].mxu0 }
 0x124   : > { %v1462_v42 = vpop.f32.mrb[1].mxu0  ;;  %v532_v44 = vmul.f32 %v1460_v41, %v1460_v41 }
 0x125   : > { %v533_v48 = vmul.f32 %v1462_v42, %v1462_v42 }
 0x127   : > { %v1464_v43 = vpop.f32.mrb[2].mxu0 }
 0x128   : > { %v490_v45 = vadd.f32 %v1464_v43, %v1460_v41  ;;  %v534_v46 = vmul.f32 %v1464_v43, %v1464_v43  ;;  %v1472_v47 = vpop.f32.mrb[3].mxu0 }
 0x129   : > { %v511_v49 = vadd.f32 %v1472_v47, %v1462_v42  ;;  %v535_v50 = vmul.f32 %v1472_v47, %v1472_v47 }
 0x12a   : > { %v564_v51 = vadd.f32 %v534_v46, %v532_v44  ;;  %v1253_v44 = vmov 0  }
 0x12b   : > { %v585_v52 = vadd.f32 %v535_v50, %v533_v48  ;;  %v1480_v53 = vpop.f32.mrb[4].mxu0  ;;  %1131 = vset.pattern.permute.xlu0 %v1253_v44  ;;  %1132 = vset.pattern.permute.xlu1 %v1253_v44 }
 0x12c   : > { %v491_v54 = vadd.f32 %v490_v45, %v1480_v53  ;;  %v536_v55 = vmul.f32 %v1480_v53, %v1480_v53  ;;  %v1485_v56 = vpop.f32.mrb[5].mxu0  ;;  %700 = vperm.xlu0 %1131, %v690_v37   ;;  %710 = vperm.xlu1 %1132, %v692_v38  }
 0x12d   : > { %v512_v57 = vadd.f32 %v511_v49, %v1485_v56  ;;  %v537_v58 = vmul.f32 %v1485_v56, %v1485_v56 }
 0x12e   : > { %v565_v59 = vadd.f32 %v564_v51, %v536_v55  ;;  %v691_v51 = vld [vmem:[%s1807_s3 + $0x8] sm:$0xff] }
 0x12f   : > { %v586_v60 = vadd.f32 %v585_v52, %v537_v58  ;;  %v1490_v61 = vpop.f32.mrb[6].mxu0  ;;  %v693_v52 = vld [vmem:[%s1807_s3 + $0x18] sm:$0xff] }
 0x130   : > { %v492_v62 = vadd.f32 %v491_v54, %v1490_v61  ;;  %v538_v63 = vmul.f32 %v1490_v61, %v1490_v61  ;;  %v1495_v1 = vpop.f32.mrb[7].mxu0  ;;  %705 = vperm.xlu0 %1131, %v691_v51   ;;  %715 = vperm.xlu1 %1132, %v693_v52  }
 0x131   : > { %v513_v2 = vadd.f32 %v512_v57, %v1495_v1  ;;  %v539_v3 = vmul.f32 %v1495_v1, %v1495_v1 }
 0x132   : > { %v566_v4 = vadd.f32 %v565_v59, %v538_v63 }
 0x133   : > { %v587_v5 = vadd.f32 %v586_v60, %v539_v3  ;;  %v1500_v6 = vpop.f32.mrb[8].mxu0  ;;  %v694_v3 = vld [vmem:[%s1807_s3 + $0x20] sm:$0xff] }
 0x134   : > { %v493_v7 = vadd.f32 %v492_v62, %v1500_v6  ;;  %v540_v8 = vmul.f32 %v1500_v6, %v1500_v6  ;;  %v1505_v9 = vpop.f32.mrb[9].mxu0  ;;  %720 = vperm.xlu0 %1131, %v694_v3  }
 0x135   : > { %v514_v10 = vadd.f32 %v513_v2, %v1505_v9  ;;  %v541_v11 = vmul.f32 %v1505_v9, %v1505_v9  ;;  %v695_v2 = vld [vmem:[%s1807_s3 + $0x28] sm:$0xff] }
 0x136   : > { %v567_v12 = vadd.f32 %v566_v4, %v540_v8  ;;  %725 = vperm.xlu1 %1132, %v695_v2  }
 0x137   : > { %v588_v13 = vadd.f32 %v587_v5, %v541_v11  ;;  %v1510_v14 = vpop.f32.mrb[10].mxu0 }
 0x138   : > { %v494_v15 = vadd.f32 %v493_v7, %v1510_v14  ;;  %v542_v16 = vmul.f32 %v1510_v14, %v1510_v14  ;;  %v1515_v17 = vpop.f32.mrb[11].mxu0 }
 0x139   : > { %v515_v18 = vadd.f32 %v514_v10, %v1515_v17  ;;  %v543_v19 = vmul.f32 %v1515_v17, %v1515_v17 }
 0x13a   : > { %v568_v20 = vadd.f32 %v567_v12, %v542_v16  ;;  %v696_v16 = vld [vmem:[%s1807_s3 + $0x30] sm:$0xff] }
 0x13b   : > { %v589_v21 = vadd.f32 %v588_v13, %v543_v19  ;;  %v1520_v22 = vpop.f32.mrb[12].mxu0  ;;  %730 = vperm.xlu0 %1131, %v696_v16  }
 0x13c   : > { %v495_v23 = vadd.f32 %v494_v15, %v1520_v22  ;;  %v544_v24 = vmul.f32 %v1520_v22, %v1520_v22  ;;  %v1525_v25 = vpop.f32.mrb[13].mxu0  ;;  %v697_v15 = vld [vmem:[%s1807_s3 + $0x38] sm:$0xff] }
 0x13d   : > { %v516_v26 = vadd.f32 %v515_v18, %v1525_v25  ;;  %v545_v27 = vmul.f32 %v1525_v25, %v1525_v25  ;;  %735 = vperm.xlu1 %1132, %v697_v15  }
 0x13e   : > { %v569_v28 = vadd.f32 %v568_v20, %v544_v24 }
 0x13f   : > { %v590_v29 = vadd.f32 %v589_v21, %v545_v27  ;;  %v1530_v30 = vpop.f32.mrb[14].mxu0 }
 0x140   : > { %v496_v31 = vadd.f32 %v495_v23, %v1530_v30  ;;  %v546_v32 = vmul.f32 %v1530_v30, %v1530_v30  ;;  %v1535_v33 = vpop.f32.mrb[15].mxu0 }
 0x141   : > { %v517_v34 = vadd.f32 %v516_v26, %v1535_v33  ;;  %v547_v35 = vmul.f32 %v1535_v33, %v1535_v33 }
 0x142   : > { %v570_v36 = vadd.f32 %v569_v28, %v546_v32 }
 0x143   : > { %v591_v39 = vadd.f32 %v590_v29, %v547_v35  ;;  %v1546_v40 = vpop.f32.mrb[16].mxu0 }
 0x144   : > { %v497_v45 = vadd.f32 %v496_v31, %v1546_v40  ;;  %v548_v46 = vmul.f32 %v1546_v40, %v1546_v40  ;;  %v1551_v48 = vpop.f32.mrb[17].mxu0 }
 0x145   : > { %v518_v49 = vadd.f32 %v517_v34, %v1551_v48  ;;  %v549_v50 = vmul.f32 %v1551_v48, %v1551_v48 }
 0x146   : > { %v571_v54 = vadd.f32 %v570_v36, %v548_v46 }
 0x147   : > { %v592_v55 = vadd.f32 %v591_v39, %v549_v50  ;;  %v1562_v57 = vpop.f32.mrb[18].mxu0 }
 0x148   : > { %v498_v58 = vadd.f32 %v497_v45, %v1562_v57  ;;  %v550_v59 = vmul.f32 %v1562_v57, %v1562_v57  ;;  %v1567_v60 = vpop.f32.mrb[19].mxu0 }
 0x149   : > { %v519_v62 = vadd.f32 %v518_v49, %v1567_v60  ;;  %v551_v63 = vmul.f32 %v1567_v60, %v1567_v60 }
 0x14a   : > { %v572_v4 = vadd.f32 %v571_v54, %v550_v59 }
 0x14b   : > { %v593_v5 = vadd.f32 %v592_v55, %v551_v63  ;;  %v1578_v7 = vpop.f32.mrb[20].mxu0 }
 0x14c   : > { %v499_v8 = vadd.f32 %v498_v58, %v1578_v7  ;;  %v552_v10 = vmul.f32 %v1578_v7, %v1578_v7  ;;  %v1583_v11 = vpop.f32.mrb[21].mxu0 }
 0x14d   : > { %v520_v12 = vadd.f32 %v519_v62, %v1583_v11  ;;  %v553_v13 = vmul.f32 %v1583_v11, %v1583_v11 }
 0x14e   : > { %v573_v18 = vadd.f32 %v572_v4, %v552_v10 }
 0x14f   : > { %v594_v19 = vadd.f32 %v593_v5, %v553_v13  ;;  %v1594_v20 = vpop.f32.mrb[22].mxu0 }
 0x150   : > { %v500_v21 = vadd.f32 %v499_v8, %v1594_v20  ;;  %v554_v23 = vmul.f32 %v1594_v20, %v1594_v20  ;;  %v1599_v24 = vpop.f32.mrb[23].mxu0 }
 0x151   : > { %v521_v26 = vadd.f32 %v520_v12, %v1599_v24  ;;  %v555_v27 = vmul.f32 %v1599_v24, %v1599_v24 }
 0x152   : > { %v574_v28 = vadd.f32 %v573_v18, %v554_v23 }
 0x153   : > { %v595_v29 = vadd.f32 %v594_v19, %v555_v27  ;;  %v1604_v31 = vpop.f32.mrb[24].mxu0 }
 0x154   : > { %v501_v32 = vadd.f32 %v500_v21, %v1604_v31  ;;  %v556_v34 = vmul.f32 %v1604_v31, %v1604_v31  ;;  %v1609_v35 = vpop.f32.mrb[25].mxu0 }
 0x155   : > { %v522_v36 = vadd.f32 %v521_v26, %v1609_v35  ;;  %v557_v37 = vmul.f32 %v1609_v35, %v1609_v35 }
 0x156   : > { %v575_v38 = vadd.f32 %v574_v28, %v556_v34 }
 0x157   : > { %v596_v39 = vadd.f32 %v595_v29, %v557_v37  ;;  %v1614_v44 = vpop.f32.mrb[26].mxu0 }
 0x158   : > { %v502_v45 = vadd.f32 %v501_v32, %v1614_v44  ;;  %v558_v46 = vmul.f32 %v1614_v44, %v1614_v44  ;;  %v1619_v49 = vpop.f32.mrb[27].mxu0 }
 0x159   : > { %v523_v50 = vadd.f32 %v522_v36, %v1619_v49  ;;  %v559_v51 = vmul.f32 %v1619_v49, %v1619_v49 }
 0x15a   : > { %v576_v52 = vadd.f32 %v575_v38, %v558_v46 }
 0x15b   : > { %v597_v54 = vadd.f32 %v596_v39, %v559_v51  ;;  %v1624_v55 = vpop.f32.mrb[28].mxu0 }
 0x15c   : > { %v503_v58 = vadd.f32 %v502_v45, %v1624_v55  ;;  %v560_v59 = vmul.f32 %v1624_v55, %v1624_v55  ;;  %v1629_v62 = vpop.f32.mrb[29].mxu0 }
 0x15d   : > { %v524_v63 = vadd.f32 %v523_v50, %v1629_v62  ;;  %v561_v2 = vmul.f32 %v1629_v62, %v1629_v62 }
 0x15e   : > { %v577_v3 = vadd.f32 %v576_v52, %v560_v59 }
 0x15f   : > { %v598_v4 = vadd.f32 %v597_v54, %v561_v2  ;;  %v1634_v5 = vpop.f32.mrb[30].mxu0 }
 0x160   : > { %v504_v8 = vadd.f32 %v503_v58, %v1634_v5  ;;  %v562_v10 = vmul.f32 %v1634_v5, %v1634_v5  ;;  %v1639_v12 = vpop.f32.mrb[31].mxu0 }
 0x161   : > { %v525_v13 = vadd.f32 %v524_v63, %v1639_v12  ;;  %v563_v15 = vmul.f32 %v1639_v12, %v1639_v12 }
 0x162   : > { %v505_v16 = vrot.slane %v504_v8, 4  ;;  %v578_v18 = vadd.f32 %v577_v3, %v562_v10 }
 0x163   : > { %v526_v19 = vrot.slane %v525_v13, 4  ;;  %v599_v21 = vadd.f32 %v598_v4, %v563_v15 }
 0x164   : > { %v506_v23 = vadd.f32 %v505_v16, %v504_v8  ;;  %v579_v26 = vrot.slane %v578_v18, 4 }
 0x165   : > { %v527_v27 = vadd.f32 %v526_v19, %v525_v13  ;;  %v600_v28 = vrot.slane %v599_v21, 4 }
 0x166   : > { %v507_v29 = vrot.slane %v506_v23, 2  ;;  %v580_v32 = vadd.f32 %v579_v26, %v578_v18 }
 0x167   : > { %v528_v34 = vrot.slane %v527_v27, 2  ;;  %v601_v36 = vadd.f32 %v600_v28, %v599_v21 }
 0x168   : > { %v508_v37 = vadd.f32 %v507_v29, %v506_v23  ;;  %v581_v38 = vrot.slane %v580_v32, 2 }
 0x169   : > { %v529_v39 = vadd.f32 %v528_v34, %v527_v27  ;;  %v602_v45 = vrot.slane %v601_v36, 2 }
 0x16a   : > { %v509_v46 = vrot.slane %v508_v37, 1  ;;  %v582_v50 = vadd.f32 %v581_v38, %v580_v32 }
 0x16b   : > { %v530_v51 = vrot.slane %v529_v39, 1  ;;  %v603_v52 = vadd.f32 %v602_v45, %v601_v36 }
 0x16c   : > { %v510_v54 = vadd.f32 %v509_v46, %v508_v37  ;;  %v583_v58 = vrot.slane %v582_v50, 1 }
 0x16d   : > { %v531_v59 = vadd.f32 %v530_v51, %v529_v39  ;;  %v604_v63 = vrot.slane %v603_v52, 1 }
 0x16e   : > { %v584_v2 = vadd.f32 %v583_v58, %v582_v50  ;;  %v1644_v3 = vmul.f32 0.0078125, %v510_v54 }
 0x16f   : > { %v605_v4 = vadd.f32 %v604_v63, %v603_v52  ;;  %v1646_v8 = vmul.f32 0.0078125, %v531_v59 }
 0x170   : > { %v608_v10 = vmul.f32 0.0078125, %v584_v2  ;;  %v610_v13 = vmul.f32 %v1644_v3, %v1644_v3  ;;  %v644_v15 = vsub.f32 %v1634_v5, %v1644_v3  ;;  %v614_v16 = vsub.f32 %v1460_v41, %v1644_v3 }
 0x171   : > { %v609_v18 = vmul.f32 0.0078125, %v605_v4  ;;  %v611_v19 = vmul.f32 %v1646_v8, %v1646_v8  ;;  %v645_v21 = vsub.f32 %v1639_v12, %v1646_v8  ;;  %v615_v23 = vsub.f32 %v1462_v42, %v1646_v8 }
 0x172   : > { %v612_v26 = vsub.f32 %v608_v10, %v610_v13  ;;  %v617_v27 = vsub.f32 %v1472_v47, %v1646_v8  ;;  %v616_v5 = vsub.f32 %v1464_v43, %v1644_v3  ;;  %v619_v41 = vsub.f32 %v1485_v56, %v1646_v8 }
 0x173   : > { %v613_v28 = vsub.f32 %v609_v18, %v611_v19  ;;  %v621_v29 = vsub.f32 %v1495_v1, %v1646_v8  ;;  %v618_v12 = vsub.f32 %v1480_v53, %v1644_v3  ;;  %v620_v42 = vsub.f32 %v1490_v61, %v1644_v3 }
 0x174   : > { %v646_v32 = vadd.f32 1e-05, %v612_v26  ;;  %v623_v47 = vsub.f32 %v1505_v9, %v1646_v8  ;;  %v625_v43 = vsub.f32 %v1515_v17, %v1646_v8  ;;  %v622_v56 = vsub.f32 %v1500_v6, %v1644_v3 }
 0x175   : > { %v647_v34 = vadd.f32 1e-05, %v613_v28  ;;  %v624_v1 = vsub.f32 %v1510_v14, %v1644_v3  ;;  %v627_v53 = vsub.f32 %v1525_v25, %v1646_v8  ;;  %v629_v61 = vsub.f32 %v1535_v33, %v1646_v8 }
 0x176   : > { %1133 = vrsqrt.f32 %v646_v32  ;;  %v626_v9 = vsub.f32 %v1520_v22, %v1644_v3  ;;  %v628_v17 = vsub.f32 %v1530_v30, %v1644_v3  ;;  %v631_v6 = vsub.f32 %v1551_v48, %v1646_v8 }
 0x177   : > { %1135 = vrsqrt.f32 %v647_v34  ;;  %v633_v14 = vsub.f32 %v1567_v60, %v1646_v8  ;;  %v630_v25 = vsub.f32 %v1546_v40, %v1644_v3  ;;  %v632_v33 = vsub.f32 %v1562_v57, %v1644_v3 }
 0x178   : > { %v635_v36 = vsub.f32 %v1583_v11, %v1646_v8  ;;  %v637_v22 = vsub.f32 %v1599_v24, %v1646_v8  ;;  %v634_v30 = vsub.f32 %v1578_v7, %v1644_v3  ;;  %v636_v48 = vsub.f32 %v1594_v20, %v1644_v3 }
 0x179   : > { %v639_v60 = vsub.f32 %v1609_v35, %v1646_v8  ;;  %v641_v40 = vsub.f32 %v1619_v49, %v1646_v8  ;;  %v638_v57 = vsub.f32 %v1604_v31, %v1644_v3  ;;  %v640_v11 = vsub.f32 %v1614_v44, %v1644_v3 }
 0x17a   : > { %v643_v24 = vsub.f32 %v1629_v62, %v1646_v8  ;;  %v642_v7 = vsub.f32 %v1624_v55, %v1644_v3 }
 0x180   : > { %v1134_v37 = vpop.eup %1133 }
 0x181   : > { %v1136_v20 = vpop.eup %1135  ;;  %v1716_v38 = vmul.f32 %v1134_v37, %v644_v15  ;;  %v650_v35 = vmul.f32 %v1134_v37, %v614_v16  ;;  %v652_v39 = vmul.f32 %v1134_v37, %v616_v5  ;;  %v654_v45 = vmul.f32 %v1134_v37, %v618_v12 }
 0x182   : > { %v681_v49 = vmul.f32 %v1136_v20, %v645_v21  ;;  %v651_v46 = vmul.f32 %v1136_v20, %v615_v23  ;;  %v653_v50 = vmul.f32 %v1136_v20, %v617_v27  ;;  %v655_v31 = vmul.f32 %v1136_v20, %v619_v41 }
 0x183   : > { %v1029_v51 = vpack.c.bf16 %v652_v39, %v650_v35  ;;  %v657_v52 = vmul.f32 %v1136_v20, %v621_v29  ;;  %v656_v44 = vmul.f32 %v1134_v37, %v620_v42  ;;  %v659_v54 = vmul.f32 %v1136_v20, %v623_v47 }
 0x184   : > { %v1027_v58 = vpack.c.bf16 %v653_v50, %v651_v46  ;;  %v661_v62 = vmul.f32 %v1136_v20, %v625_v43  ;;  %v658_v59 = vmul.f32 %v1134_v37, %v622_v56  ;;  %v660_v63 = vmul.f32 %v1134_v37, %v624_v1 }
 0x185   : > { %v1031_v55 = vpack.c.bf16 %v657_v52, %v655_v31  ;;  %v1033_v2 = vpack.c.bf16 %v656_v44, %v654_v45  ;;  %v663_v3 = vmul.f32 %v1136_v20, %v627_v53  ;;  %v665_v4 = vmul.f32 %v1136_v20, %v629_v61 }
 0x186   : > { %1028 = vmatprep.subr.bf16.mxu1 %v1027_v58  ;;  %v1035_v8 = vpack.c.bf16 %v661_v62, %v659_v54  ;;  %v1037_v10 = vpack.c.bf16 %v660_v63, %v658_v59  ;;  %v662_v13 = vmul.f32 %v1134_v37, %v626_v9  ;;  %v664_v15 = vmul.f32 %v1134_v37, %v628_v17 }
 0x187   : > { %1030 = vmatpush1.bf16.msra.mxu1 %v1029_v51  ;;  %v1039_v16 = vpack.c.bf16 %v665_v4, %v663_v3  ;;  %v667_v18 = vmul.f32 %v1136_v20, %v631_v6  ;;  %v669_v19 = vmul.f32 %v1136_v20, %v633_v14  ;;  %v666_v21 = vmul.f32 %v1134_v37, %v630_v25  ;;  %v682_v14 = vld [vmem:[#allocation2] sm:$0xff]  ;;  %v683_v25 = vld [vmem:[#allocation2 + $0x8] sm:$0xff] }
 0x188   : > { %1032 = vmatprep.subr.bf16.mxu1 %v1031_v55  ;;  %v1041_v23 = vpack.c.bf16 %v664_v15, %v662_v13  ;;  %v668_v26 = vmul.f32 %v1134_v37, %v632_v33  ;;  %v671_v27 = vmul.f32 %v1136_v20, %v635_v36  ;;  %v673_v5 = vmul.f32 %v1136_v20, %v637_v22  ;;  %v684_v33 = vld [vmem:[#allocation2 + $0x10] sm:$0xff]  ;;  %v685_v36 = vld [vmem:[#allocation2 + $0x18] sm:$0xff]  ;;  %v686_v22 = vld [vmem:[#allocation2 + $0x20] sm:$0xff] }
 0x189   : > { %v1043_v41 = vpack.c.bf16 %v669_v19, %v667_v18  ;;  %v670_v28 = vmul.f32 %v1134_v37, %v634_v30  ;;  %v672_v29 = vmul.f32 %v1134_v37, %v636_v48  ;;  %v675_v12 = vmul.f32 %v1136_v20, %v639_v60  ;;  %v687_v30 = vld [vmem:[#allocation2 + $0x28] sm:$0xff]  ;;  %v688_v48 = vld [vmem:[#allocation2 + $0x30] sm:$0xff]  ;;  %v689_v60 = vld [vmem:[#allocation2 + $0x38] sm:$0xff] }
 0x18a   : > { %v1045_v42 = vpack.c.bf16 %v668_v26, %v666_v21  ;;  %v1047_v32 = vpack.c.bf16 %v673_v5, %v671_v27  ;;  %v677_v47 = vmul.f32 %v1136_v20, %v641_v40  ;;  %v674_v43 = vmul.f32 %v1134_v37, %v638_v57 }
 0x18b   : > { %1034 = vmatpush1.bf16.msra.mxu1 %v1033_v2  ;;  %v1049_v56 = vpack.c.bf16 %v672_v29, %v670_v28  ;;  %v676_v34 = vmul.f32 %v1134_v37, %v640_v11  ;;  %v679_v1 = vmul.f32 %v1136_v20, %v643_v24  ;;  %v678_v53 = vmul.f32 %v1134_v37, %v642_v7 }
 0x18c   : > { %1036 = vmatprep.subr.bf16.mxu1 %v1035_v8  ;;  %v1051_v61 = vpack.c.bf16 %v677_v47, %v675_v12 }
 0x18d   : > { %v1053_v9 = vpack.c.bf16 %v676_v34, %v674_v43  ;;  %v1055_v17 = vpack.c.bf16 %v681_v49, %v679_v1  ;;  %v1057_v6 = vpack.c.bf16 %v1716_v38, %v678_v53 }
 0x18f   : > { %1038 = vmatpush1.bf16.msra.mxu1 %v1037_v10 }
 0x190   : > { %1040 = vmatprep.subr.bf16.mxu1 %v1039_v16 }
 0x193   : > { %1042 = vmatpush1.bf16.msra.mxu1 %v1041_v23 }
 0x194   : > { %1044 = vmatprep.subr.bf16.mxu1 %v1043_v41 }
 0x197   : > { %1046 = vmatpush1.bf16.msra.mxu1 %v1045_v42 }
 0x198   : > { %1048 = vmatprep.subr.bf16.mxu1 %v1047_v32 }
 0x19b   : > { %1050 = vmatpush1.bf16.msra.mxu1 %v1049_v56 }
 0x19c   : > { %1052 = vmatprep.subr.bf16.mxu1 %v1051_v61 }
 0x19f   : > { %1054 = vmatpush1.bf16.msra.mxu1 %v1053_v9 }
 0x1a0   : > { %1056 = vmatprep.subr.bf16.mxu1 %v1055_v17 }
 0x1a3   : > { %1058 = vmatpush1.bf16.msra.mxu1 %v1057_v6 }
 0x1a6   : > { %803 = vmatmul.mubr.f32.vlgmr.msra.gmra.mrb[0].mxu1 %v682_v14 }
 0x1a7   : > { %808 = vmatprep.mubr.f32.mxu1 %v1252_v0 }
 0x1aa   : > { %809 = vmatmul.mubr.f32.gmra.mrb[2].mxu1 %v683_v25 }
 0x1ab   : > { %814 = vmatprep.mubr.f32.mxu1 %v1252_v0  ;;  %v701_v40 = vpop.permute.xlu0 %700  ;;  %v711_v35 = vpop.permute.xlu1 %710 }
 0x1ae   : > { %815 = vmatmul.mubr.f32.gmra.mrb[4].mxu1 %v684_v33 }
 0x1af   : > { %820 = vmatprep.mubr.f32.mxu1 %v1252_v0  ;;  %v706_v37 = vpop.permute.xlu0 %705  ;;  %v716_v31 = vpop.permute.xlu1 %715 }
 0x1b2   : > { %821 = vmatmul.mubr.f32.gmra.mrb[6].mxu1 %v685_v36 }
 0x1b3   : > { %826 = vmatprep.mubr.f32.mxu1 %v1252_v0  ;;  %v721_v58 = vpop.permute.xlu0 %720 }
 0x1b5   : > { %v726_v2 = vpop.permute.xlu1 %725 }
 0x1b6   : > { %827 = vmatmul.mubr.f32.gmra.mrb[8].mxu1 %v686_v22 }
 0x1b7   : > { %832 = vmatprep.mubr.f32.mxu1 %v1252_v0 }
 0x1ba   : > { %833 = vmatmul.mubr.f32.gmra.mrb[10].mxu1 %v687_v30  ;;  %v731_v13 = vpop.permute.xlu0 %730 }
 0x1bb   : > { %838 = vmatprep.mubr.f32.mxu1 %v1252_v0 }
 0x1bc   : > { %v736_v21 = vpop.permute.xlu1 %735 }
 0x1be   : > { %839 = vmatmul.mubr.f32.gmra.mrb[12].mxu1 %v688_v48 }
 0x1bf   : > { %844 = vmatprep.mubr.f32.mxu1 %v1252_v0 }
 0x1c2   : > { %845 = vmatmul.mubr.f32.gmra.mrb[14].mxu1 %v689_v60 }
 0x279   : > { %v804_v57 = vpop.f32.mrb[0].mxu1 }
 0x27a   : > { %v805_v11 = vadd.f32 %v804_v57, %v701_v40  ;;  %v806_v24 = vpop.f32.mrb[1].mxu1 }
 0x27b   : > { %v807_v7 = vadd.f32 %v806_v24, %v701_v40 }
 0x27c   : > { %851 = vst [vmem:[%s1729_s11] sm:$0xff] %v805_v11 }
 0x27d   : > { %852 = vst [vmem:[%s1729_s11 + $0x8] sm:$0xff] %v807_v7  ;;  %v810_v0 = vpop.f32.mrb[2].mxu1 }
 0x27e   : > { %v811_v20 = vadd.f32 %v810_v0, %v706_v37  ;;  %v812_v38 = vpop.f32.mrb[3].mxu1 }
 0x27f   : > { %v813_v39 = vadd.f32 %v812_v38, %v706_v37 }
 0x280   : > { %853 = vst [vmem:[%s1729_s11 + $0x10] sm:$0xff] %v811_v20 }
 0x281   : > { %854 = vst [vmem:[%s1729_s11 + $0x18] sm:$0xff] %v813_v39  ;;  %v816_v45 = vpop.f32.mrb[4].mxu1 }
 0x282   : > { %v817_v49 = vadd.f32 %v816_v45, %v711_v35  ;;  %v818_v46 = vpop.f32.mrb[5].mxu1 }
 0x283   : > { %v819_v50 = vadd.f32 %v818_v46, %v711_v35 }
 0x284   : > { %855 = vst [vmem:[%s1729_s11 + $0x20] sm:$0xff] %v817_v49 }
 0x285   : > { %856 = vst [vmem:[%s1729_s11 + $0x28] sm:$0xff] %v819_v50  ;;  %v822_v51 = vpop.f32.mrb[6].mxu1 }
 0x286   : > { %v823_v52 = vadd.f32 %v822_v51, %v716_v31  ;;  %v824_v44 = vpop.f32.mrb[7].mxu1 }
 0x287   : > { %v825_v54 = vadd.f32 %v824_v44, %v716_v31 }
 0x288   : > { %857 = vst [vmem:[%s1729_s11 + $0x30] sm:$0xff] %v823_v52 }
 0x289   : > { %858 = vst [vmem:[%s1729_s11 + $0x38] sm:$0xff] %v825_v54  ;;  %v828_v62 = vpop.f32.mrb[8].mxu1 }
 0x28a   : > { %v829_v59 = vadd.f32 %v828_v62, %v721_v58  ;;  %v830_v63 = vpop.f32.mrb[9].mxu1 }
 0x28b   : > { %v831_v55 = vadd.f32 %v830_v63, %v721_v58 }
 0x28c   : > { %859 = vst [vmem:[%s1729_s11 + $0x40] sm:$0xff] %v829_v59 }
 0x28d   : > { %860 = vst [vmem:[%s1729_s11 + $0x48] sm:$0xff] %v831_v55  ;;  %v834_v3 = vpop.f32.mrb[10].mxu1 }
 0x28e   : > { %v835_v4 = vadd.f32 %v834_v3, %v726_v2  ;;  %v836_v8 = vpop.f32.mrb[11].mxu1 }
 0x28f   : > { %v837_v10 = vadd.f32 %v836_v8, %v726_v2 }
 0x290   : > { %861 = vst [vmem:[%s1729_s11 + $0x50] sm:$0xff] %v835_v4 }
 0x291   : > { %862 = vst [vmem:[%s1729_s11 + $0x58] sm:$0xff] %v837_v10  ;;  %v840_v15 = vpop.f32.mrb[12].mxu1 }
 0x292   : > { %v841_v16 = vadd.f32 %v840_v15, %v731_v13  ;;  %v842_v18 = vpop.f32.mrb[13].mxu1 }
 0x293   : > { %v843_v19 = vadd.f32 %v842_v18, %v731_v13 }
 0x294   : > { %863 = vst [vmem:[%s1729_s11 + $0x60] sm:$0xff] %v841_v16 }
 0x295   : > { %864 = vst [vmem:[%s1729_s11 + $0x68] sm:$0xff] %v843_v19  ;;  %v846_v23 = vpop.f32.mrb[14].mxu1 }
 0x296   : > { %v847_v26 = vadd.f32 %v846_v23, %v736_v21  ;;  %v848_v27 = vpop.f32.mrb[15].mxu1 }
 0x297   : > { %v849_v5 = vadd.f32 %v848_v27, %v736_v21 }
 0x298   : > { %865 = vst [vmem:[%s1729_s11 + $0x70] sm:$0xff] %v847_v26 }
 0x299   : > { %866 = vst [vmem:[%s1729_s11 + $0x78] sm:$0xff] %v849_v5 }
 0x29a   : > { %1178 = shalt.err (!%p1175_p6)
}
 0x29b   : > { %s1179_s7 = scalar_lea.hbm %s1750_s22, 2048  ;;  %s1183_s29 = scalar_lea.hbm %s1808_s4, 4096 }
 0x29c   : > { %p1180_p7 = scmp.ne.s32.totalorder %s1750_s22, %s1179_s7  ;;  %p1184_p0 = scmp.lt.u32.totalorder %s1750_s22, %s1808_s4 }
 0x29d   : > { %p1185_p2 = scmp.lt.u32.totalorder %s1183_s29, %s1179_s7  ;;  %p1187_p8 = scmp.lt.u32.totalorder %s1179_s7, %s1750_s22 }
 0x29e   : > { %p1181_p9 = pnand %p1180_p7, %p1820_p10 }
 0x29f   : > { %p1186_p4 = por %p1185_p2, %p1184_p0 }
 0x2a0   : > { %p1182_p12 = pneg %p1181_p9 }
 0x2a1   : > { %p1188_p11 = por %p1187_p8, %p1186_p4 }
 0x2a3   : > { %p1189_p13 = pnand %p1188_p11, %p1182_p12 }
 0x2a5   : > { %1192 = shalt.err (!%p1189_p13)
}
 0x2a6   : > { %s1255_s11 = smov 256   ;;  %s1256_s12 = smov 16  }
 0x2a7   : > { %1063 = dma.vmem_to_hbm [thread:$0]  (%p1820_p10), %s1752_s13, 2048, %s1750_s22, %s1758_s18, %s1255_s11, %s1255_s11, %s1256_s12  }
 0x2a8 PF: > { %p1075_p1 = scmp.ge.s32.totalorder %s1247_s20, 2  ;;  %s899_s14 = sand.u32 1, %s1227_s15  }
 0x2a9   : > { %p1821_p3 = scmp.ne.s32.totalorder %s1814_s27, 0  ;;  %s900_s21 = scalar_lea.sflag [#allocation4], %s899_s14 }
 0x2ab   : > { %p1070_p5 = pnand %p1075_p1, %p1821_p3 }
 0x2ad   : > { %1222 = dma.done.wait (!%p1070_p5), %s900_s21, 2048  }
 0x2ae   : > { %1224 = vsyncadd (!%p1070_p5), %s900_s21, 4294965248  ;;  %s18_s20 = sadd.s32 1, %s1247_s20   ;;  %s1822_s15 = smov %s1231_s16 }
 0x2af   : > { %p15_p6 = scmp.ge.s32.totalorder %s18_s20, 4   ;;  %s1823_s16 = smov %s1235_s17 }
 0x2b0   : > { %s1824_s17 = smov %s1335_s28  ;;  %s1825_s18 = smov %s1243_s19 }
 0x2b1   : > { %s1826_s19 = smov %s1828_s23  ;;  %17 = sbr.rel (!%p15_p6) target bundleno = 5 (0x5), region = 76 }
 0x2b8   :  { %905 = vsyncpa [#allocation3], 1 }
 0x2b9   :  { %907 = vsyncpa [#allocation3 + $0x1], 1 }
 0x2ba   :  { %908 = vsyncpa [#allocation4], 1 }
 0x2bb   :  { %910 = vsyncpa [#allocation4 + $0x1], 1 }

</bundles_post_ra>
